<compile_context>
chip_gen: v6e
topology: v6e:2x2x1
jax: 0.10.0
libtpu: 0.0.40
codegen_flags: <defaults>
</compile_context>

<pallas_src>
import functools

import jax
import jax.numpy as jnp
from jax import lax
from jax.experimental import pallas as pl
from jax.experimental.pallas import tpu as pltpu


def ppsa_kernel(x_ref, wq_ref, wchwv_ref, wchwz_ref, wspwq_ref, wspwv_ref,
                caux_ref, c2aux_ref, out_ref,
                a2_sc, m_sc, s_sc, cw_sc, wsp_sc, sb_sc, *, eps, inv_l):
    p = pl.program_id(1)          # 0 = reduction pass, 1 = apply pass
    l = pl.program_id(2)          # L-tile index
    n_l = pl.num_programs(2)

    @pl.when(p == 0)
    def _reduce_pass():
        @pl.when(l == 0)
        def _init():
            m_sc[...] = jnp.full_like(m_sc, -1e30)
            s_sc[...] = jnp.zeros_like(s_sc)
            a2_sc[...] = jnp.zeros_like(a2_sc)

        x_t = x_ref[...]                                             # (C, tl), x dtype

        # channel-branch query logits for this tile (ch_wq bias dropped: a constant
        # added to every spatial position cancels in the softmax over L).
        q_log = jnp.dot(wq_ref[...], x_t,
                        preferred_element_type=jnp.float32)          # (1, tl) f32

        # online softmax statistics over L
        m_prev = m_sc[...]
        m_new = jnp.maximum(m_prev, jnp.max(q_log, axis=-1, keepdims=True))
        corr = jnp.exp(m_prev - m_new)                               # (1, 1)
        e = jnp.exp(q_log - m_new)                                   # (1, tl) f32
        m_sc[...] = m_new
        s_sc[...] = s_sc[...] * corr + jnp.sum(e, axis=-1, keepdims=True)

        # Both L-contractions of x (softmax numerator for the channel branch and the
        # plain sum for the spatial branch's global average pool) in ONE MXU dot.
        r2 = jnp.concatenate([e, jnp.ones_like(e)], axis=0).astype(x_t.dtype)  # (2, tl)
        contrib = lax.dot_general(x_t, r2, (((1,), (1,)), ((), ())),
                                  preferred_element_type=jnp.float32)          # (C, 2)
        rescale = jnp.concatenate([corr, jnp.ones_like(corr)], axis=1)         # (1, 2)
        a2_sc[...] = a2_sc[...] * rescale + contrib

        @pl.when(l == n_l - 1)
        def _finalize():
            # Tiny once-per-sample epilogue; gate math kept in f32.
            xq = a2_sc[:, 0:1] / s_sc[...]            # (C,1) = x @ softmax(q)
            xm = a2_sc[:, 1:2] * inv_l                # (C,1) = spatial mean of x

            b_chwv = c2aux_ref[:, 0:1]
            b_spwq = c2aux_ref[:, 1:2]
            b_spwv = c2aux_ref[:, 2:3]
            b_chwz = caux_ref[:, 0:1]
            ln_g = caux_ref[:, 1:2]
            ln_b = caux_ref[:, 2:3]

            # channel gate: exact because sum(softmax) == 1
            ch_wz = jnp.dot(wchwv_ref[...], xq,
                            preferred_element_type=jnp.float32) + b_chwv   # (c2,1)
            z = jnp.dot(wchwz_ref[...], ch_wz,
                        preferred_element_type=jnp.float32) + b_chwz       # (C,1)
            mu = jnp.mean(z, axis=0, keepdims=True)
            var = jnp.mean((z - mu) ** 2, axis=0, keepdims=True)
            zn = (z - mu) * lax.rsqrt(var + eps)
            cw_sc[...] = jax.nn.sigmoid(zn * ln_g + ln_b)                   # (C,1)

            # spatial gate ingredients: sq = softmax_c2(W_spwq @ mean(x) + b_spwq),
            # then fold sq through W_spwv so pass 1 only needs a single (1, C) row.
            sq_log = jnp.dot(wspwq_ref[...], xm,
                             preferred_element_type=jnp.float32) + b_spwq  # (c2,1)
            sq_e = jnp.exp(sq_log - jnp.max(sq_log, axis=0, keepdims=True))
            sq = sq_e / jnp.sum(sq_e, axis=0, keepdims=True)                # (c2,1)
            # (c2, C) contraction, once per sample -> negligible cost.
            wsp_sc[...] = jnp.sum(sq * wspwv_ref[...], axis=0,
                                  keepdims=True).astype(wsp_sc.dtype)       # (1, C)
            sb_sc[...] = jnp.sum(sq * b_spwv, axis=0, keepdims=True)        # (1, 1)

    @pl.when(p == 1)
    def _apply_pass():
        x_t = x_ref[...]                                              # (C, tl)
        sp_logit = jnp.dot(wsp_sc[...], x_t,
                           preferred_element_type=jnp.float32) + sb_sc[...]  # (1, tl)
        sw = jax.nn.sigmoid(sp_logit).astype(x_t.dtype)               # per-pixel gate
        cw = cw_sc[...].astype(x_t.dtype)                             # per-channel gate
        out_ref[...] = (x_t * cw + x_t * sw).astype(out_ref.dtype)


def _pick_tile_l(C, L, itemsize, max_tile_l=None):
    if max_tile_l is None:
        # ~4 MiB per x block -> double-buffered x+out tiles fit v7x's 64 MiB VMEM.
        budget = 4 * 1024 * 1024
        max_tile_l = max(128, (budget // max(C * itemsize, 1)) // 128 * 128)
    if L <= max_tile_l:
        return L
    if L % 128 != 0:
        return L   # TODO(synk): pad/mask ragged spatial extents.
    tl = 128
    for t in range(128, max_tile_l + 1, 128):
        if L % t == 0:
            tl = t
    return tl


def _default_vmem_limit_bytes():
    try:
        cap = getattr(pltpu.get_tpu_info(), "vmem_capacity_bytes", None)
    except Exception:
        cap = None
    if cap is None:
        return None
    # ~85% of physical VMEM: ~109 MiB on v5e/v6e (128 MiB), ~54 MiB on v7x (64 MiB).
    return int(cap * 0.85)


def ppsa(x, params, *, eps=1e-5, max_tile_l=None, vmem_limit_bytes=None):
    N, C, H, W = x.shape
    L = H * W
    (w_chwv, b_chwv, w_chwq, _b_chwq, w_chwz, b_chwz,
     ln_g, ln_b, w_spwv, b_spwv, w_spwq, b_spwq) = params
    # _b_chwq is mathematically irrelevant: constant shifts cancel in softmax over L.

    cdt = x.dtype
    # Streaming weight (used every tile) runs in x's dtype (bf16 x -> bf16 MXU).
    wq_row = w_chwq.astype(cdt)                                       # (1, C)
    # Finalize-path weights stay f32: tiny, once per sample, keeps gates accurate.
    w_chwv32 = w_chwv.astype(jnp.float32)
    w_chwz32 = w_chwz.astype(jnp.float32)
    w_spwq32 = w_spwq.astype(jnp.float32)
    w_spwv32 = w_spwv.astype(jnp.float32)
    caux = jnp.stack([b_chwz, ln_g, ln_b], axis=1).astype(jnp.float32)       # (C, 3)
    c2aux = jnp.stack([b_chwv, b_spwq, b_spwv], axis=1).astype(jnp.float32)  # (c2, 3)

    x_flat = x.reshape(N, C, L)                # lane-dense layout: last dim = H*W
    tl = _pick_tile_l(C, L, x.dtype.itemsize, max_tile_l)
    n_l = L // tl
    if vmem_limit_bytes is None:
        vmem_limit_bytes = _default_vmem_limit_bytes()

    kernel = functools.partial(ppsa_kernel, eps=eps, inv_l=1.0 / L)

    def const_spec(a):
        return pl.BlockSpec(a.shape, lambda n, p, l: (0, 0))

    in_specs = [pl.BlockSpec((pl.Squeezed(), C, tl), lambda n, p, l: (n, 0, l))]
    in_specs += [const_spec(a) for a in
                 (wq_row, w_chwv32, w_chwz32, w_spwq32, w_spwv32, caux, c2aux)]

    # Pass 0 never writes the output; park its block index at tile 0 so nothing is
    # written back until pass 1 has fully produced that tile.
    out_specs = pl.BlockSpec((pl.Squeezed(), C, tl), lambda n, p, l: (n, 0, l * p))

    out = pl.pallas_call(
        kernel,
        out_shape=jax.ShapeDtypeStruct((N, C, L), cdt),
        grid=(N, 2, n_l),
        in_specs=in_specs,
        out_specs=out_specs,
        scratch_shapes=[
            pltpu.VMEM((C, 2), jnp.float32),   # [x @ exp(q-m), x @ 1] accumulators
            pltpu.VMEM((1, 1), jnp.float32),   # running max of channel-query logits
            pltpu.VMEM((1, 1), jnp.float32),   # running sum of exp
            pltpu.VMEM((C, 1), jnp.float32),   # channel gate (sigmoid(LN(...)))
            pltpu.VMEM((1, C), cdt),           # fused spatial row sq^T @ W_spwv
            pltpu.VMEM((1, 1), jnp.float32),   # spatial bias sq^T @ b_spwv
        ],
        compiler_params=pltpu.CompilerParams(
            dimension_semantics=("parallel", "arbitrary", "arbitrary"),
            vmem_limit_bytes=vmem_limit_bytes,
        ),
    )(x_flat, wq_row, w_chwv32, w_chwz32, w_spwq32, w_spwv32, caux, c2aux)
    return out.reshape(N, C, H, W)


def ppsa_ref(x, params, *, eps=1e-5):
    """Pure-JAX reference mirroring the PyTorch forward exactly."""
    (w_chwv, b_chwv, w_chwq, b_chwq, w_chwz, b_chwz,
     ln_g, ln_b, w_spwv, b_spwv, w_spwq, b_spwq) = params
    N, C, H, W = x.shape
    c2 = C // 2
    L = H * W

    def conv1x1(w, b, t):
        return jnp.einsum('oc,nchw->nohw', w, t) + b[None, :, None, None]

    # channel branch
    ch_wv = conv1x1(w_chwv, b_chwv, x).reshape(N, c2, L)
    ch_wq = conv1x1(w_chwq, b_chwq, x).reshape(N, L, 1)
    ch_wq = jax.nn.softmax(ch_wq, axis=1)
    ch_wz = jnp.matmul(ch_wv, ch_wq)                                     # (N, c2, 1)
    z = jnp.einsum('oc,ncx->nox', w_chwz, ch_wz) + b_chwz[None, :, None]  # (N, C, 1)
    zt = z[:, :, 0]
    mu = jnp.mean(zt, axis=1, keepdims=True)
    var = jnp.mean((zt - mu) ** 2, axis=1, keepdims=True)
    zn = (zt - mu) / jnp.sqrt(var + eps) * ln_g[None] + ln_b[None]
    cw = jax.nn.sigmoid(zn)[:, :, None, None]
    channel_out = cw * x

    # spatial branch
    sp_wv = conv1x1(w_spwv, b_spwv, x).reshape(N, c2, L)
    sp_wq = conv1x1(w_spwq, b_spwq, x)
    sp_wq = jnp.mean(sp_wq, axis=(2, 3))                                 # agp -> (N, c2)
    sp_wq = jax.nn.softmax(sp_wq, axis=-1)[:, None, :]                   # (N, 1, c2)
    sp_wz = jnp.matmul(sp_wq, sp_wv)                                     # (N, 1, L)
    sw = jax.nn.sigmoid(sp_wz).reshape(N, 1, H, W)
    spatial_out = sw * x
    return spatial_out + channel_out


def make_params(key, channel):
    c2 = channel // 2
    ks = jax.random.split(key, 12)
    s = 0.2
    w_chwv = jax.random.normal(ks[0], (c2, channel), jnp.float32) * s
    b_chwv = jax.random.normal(ks[1], (c2,), jnp.float32) * 0.1
    w_chwq = jax.random.normal(ks[2], (1, channel), jnp.float32) * s
    b_chwq = jax.random.normal(ks[3], (1,), jnp.float32) * 0.1
    w_chwz = jax.random.normal(ks[4], (channel, c2), jnp.float32) * s
    b_chwz = jax.random.normal(ks[5], (channel,), jnp.float32) * 0.1
    ln_g = 1.0 + 0.1 * jax.random.normal(ks[6], (channel,), jnp.float32)
    ln_b = 0.1 * jax.random.normal(ks[7], (channel,), jnp.float32)
    w_spwv = jax.random.normal(ks[8], (c2, channel), jnp.float32) * s
    b_spwv = jax.random.normal(ks[9], (c2,), jnp.float32) * 0.1
    w_spwq = jax.random.normal(ks[10], (c2, channel), jnp.float32) * s
    b_spwq = jax.random.normal(ks[11], (c2,), jnp.float32) * 0.1
    return (w_chwv, b_chwv, w_chwq, b_chwq, w_chwz, b_chwz,
            ln_g, ln_b, w_spwv, b_spwv, w_spwq, b_spwq)


if __name__ == "__main__":
    N, C, H, W = 2, 4, 16, 16
    key = jax.random.PRNGKey(0)
    kx, kp = jax.random.split(key)
    x = jax.random.normal(kx, (N, C, H, W), jnp.float32)
    params = make_params(kp, channel=C)

    ref = ppsa_ref(x, params)

    # f32 path, single L-tile per sample.
    out = jax.block_until_ready(ppsa(x, params))
    assert out.shape == (N, C, H, W)
    assert jnp.allclose(out, ref, atol=2e-5, rtol=2e-5), (
        f"f32 max abs err = {jnp.max(jnp.abs(out - ref))}")

    # f32 path with forced L-tiling (exercises the two-pass online-softmax grid).
    out_tiled = jax.block_until_ready(ppsa(x, params, max_tile_l=128))
    assert jnp.allclose(out_tiled, ref, atol=2e-5, rtol=2e-5), (
        f"tiled f32 max abs err = {jnp.max(jnp.abs(out_tiled - ref))}")

    # bf16 streaming path (MXU-native on v5e/v6e/v7x); gate math stays in f32.
    xb = x.astype(jnp.bfloat16)
    out_b = jax.block_until_ready(ppsa(xb, params))
    ref_b = ppsa_ref(xb.astype(jnp.float32), params)
    assert out_b.dtype == jnp.bfloat16
    assert jnp.allclose(out_b.astype(jnp.float32), ref_b, atol=1e-1, rtol=1e-1), (
        f"bf16 max abs err = {jnp.max(jnp.abs(out_b.astype(jnp.float32) - ref_b))}")

    print("KERNEL_OK")
</pallas_src>

<mosaic_0001>
module attributes {stable_mosaic.version = 11 : i64} {
  func.func @ppsa_kernel(%arg0: i32, %arg1: i32, %arg2: i32, %arg3: memref<1x4x256xf32, #tpu.memory_space<vmem>>, %arg4: memref<1x4xf32, #tpu.memory_space<vmem>>, %arg5: memref<2x4xf32, #tpu.memory_space<vmem>>, %arg6: memref<4x2xf32, #tpu.memory_space<vmem>>, %arg7: memref<2x4xf32, #tpu.memory_space<vmem>>, %arg8: memref<2x4xf32, #tpu.memory_space<vmem>>, %arg9: memref<4x3xf32, #tpu.memory_space<vmem>>, %arg10: memref<2x3xf32, #tpu.memory_space<vmem>>, %arg11: memref<1x4x256xf32, #tpu.memory_space<vmem>>, %arg12: memref<4x2xf32, #tpu.memory_space<vmem>>, %arg13: memref<1x1xf32, #tpu.memory_space<vmem>>, %arg14: memref<1x1xf32, #tpu.memory_space<vmem>>, %arg15: memref<4x1xf32, #tpu.memory_space<vmem>>, %arg16: memref<1x4xf32, #tpu.memory_space<vmem>>, %arg17: memref<1x1xf32, #tpu.memory_space<vmem>>) attributes {dimension_semantics = [#tpu.dimension_semantics<parallel>, #tpu.dimension_semantics<arbitrary>, #tpu.dimension_semantics<arbitrary>], iteration_bounds = array<i64: 2, 2, 1>, scalar_prefetch = 0 : i64, scratch_operands = 6 : i64, tpu.core_type = #tpu.core_type<tc>, window_params = [{transform_indices = @transform_0, window_bounds = array<i64: 1, 4, 256>}, {pipeline_mode = #tpu.pipeline_mode<synchronous>, transform_indices = @transform_1, window_bounds = array<i64: 1, 4>}, {pipeline_mode = #tpu.pipeline_mode<synchronous>, transform_indices = @transform_2, window_bounds = array<i64: 2, 4>}, {pipeline_mode = #tpu.pipeline_mode<synchronous>, transform_indices = @transform_3, window_bounds = array<i64: 4, 2>}, {pipeline_mode = #tpu.pipeline_mode<synchronous>, transform_indices = @transform_4, window_bounds = array<i64: 2, 4>}, {pipeline_mode = #tpu.pipeline_mode<synchronous>, transform_indices = @transform_5, window_bounds = array<i64: 2, 4>}, {pipeline_mode = #tpu.pipeline_mode<synchronous>, transform_indices = @transform_6, window_bounds = array<i64: 4, 3>}, {pipeline_mode = #tpu.pipeline_mode<synchronous>, transform_indices = @transform_7, window_bounds = array<i64: 2, 3>}, {transform_indices = @transform_8, window_bounds = array<i64: 1, 4, 256>}]} {
    %c0_i32 = arith.constant 0 : i32
    %0 = arith.cmpi eq, %arg1, %c0_i32 : i32
    %1 = arith.extui %0 : i1 to i32
    %c0_i32_0 = arith.constant 0 : i32
    %2 = arith.cmpi ne, %1, %c0_i32_0 : i32
    scf.if %2 {
      %c0_i32_2 = arith.constant 0 : i32
      %6 = arith.cmpi eq, %arg2, %c0_i32_2 : i32
      %7 = arith.extui %6 : i1 to i32
      %c0_i32_3 = arith.constant 0 : i32
      %8 = arith.cmpi ne, %7, %c0_i32_3 : i32
      scf.if %8 {
        %cst_27 = arith.constant -1.000000e+30 : f32
        %42 = vector.broadcast %cst_27 : f32 to vector<1x1xf32>
        %c0_28 = arith.constant 0 : index
        %c0_29 = arith.constant 0 : index
        %43 = vector.load %arg13[%c0_28, %c0_29] : memref<1x1xf32, #tpu.memory_space<vmem>>, vector<1x1xf32>
        tpu.vector_store %arg13[%c0_28, %c0_29], %42 {strides = array<i32>} : memref<1x1xf32, #tpu.memory_space<vmem>>, vector<1x1xf32>,
        %cst_30 = arith.constant 0.000000e+00 : f32
        %44 = vector.broadcast %cst_30 : f32 to vector<1x1xf32>
        %c0_31 = arith.constant 0 : index
        %c0_32 = arith.constant 0 : index
        %45 = vector.load %arg14[%c0_31, %c0_32] : memref<1x1xf32, #tpu.memory_space<vmem>>, vector<1x1xf32>
        tpu.vector_store %arg14[%c0_31, %c0_32], %44 {strides = array<i32>} : memref<1x1xf32, #tpu.memory_space<vmem>>, vector<1x1xf32>,
        %cst_33 = arith.constant 0.000000e+00 : f32
        %46 = vector.broadcast %cst_33 : f32 to vector<4x2xf32>
        %c0_34 = arith.constant 0 : index
        %c0_35 = arith.constant 0 : index
        %47 = vector.load %arg12[%c0_34, %c0_35] : memref<4x2xf32, #tpu.memory_space<vmem>>, vector<4x2xf32>
        tpu.vector_store %arg12[%c0_34, %c0_35], %46 {strides = array<i32>} : memref<4x2xf32, #tpu.memory_space<vmem>>, vector<4x2xf32>,
      } else {
      }
      %c0 = arith.constant 0 : index
      %c0_4 = arith.constant 0 : index
      %c0_5 = arith.constant 0 : index
      %9 = vector.load %arg3[%c0, %c0_4, %c0_5] : memref<1x4x256xf32, #tpu.memory_space<vmem>>, vector<1x4x256xf32>
      %10 = vector.shape_cast %9 : vector<1x4x256xf32> to vector<4x256xf32>
      %c0_6 = arith.constant 0 : index
      %c0_7 = arith.constant 0 : index
      %11 = vector.load %arg4[%c0_6, %c0_7] : memref<1x4xf32, #tpu.memory_space<vmem>>, vector<1x4xf32>
      %cst = arith.constant dense<0.000000e+00> : vector<1x256xf32>
      %12 = tpu.matmul %11, %10, %cst {dimension_numbers = #tpu.dot_dimension_numbers<[1], [0], [0], [1], [0, 0, 1, 1], [], []>} : vector<1x4xf32>, vector<4x256xf32>, vector<1x256xf32> -> vector<1x256xf32>
      %c0_8 = arith.constant 0 : index
      %c0_9 = arith.constant 0 : index
      %13 = vector.load %arg13[%c0_8, %c0_9] : memref<1x1xf32, #tpu.memory_space<vmem>>, vector<1x1xf32>
      %cst_10 = arith.constant dense<0xFF800000> : vector<1xf32>
      %14 = vector.multi_reduction <maximumf>, %12, %cst_10 [1] : vector<1x256xf32> to vector<1xf32>
      %15 = vector.shape_cast %14 : vector<1xf32> to vector<1x1xf32>
      %16 = arith.maximumf %13, %15 : vector<1x1xf32>
      %17 = arith.subf %13, %16 : vector<1x1xf32>
      %18 = math.exp %17 : vector<1x1xf32>
      %19 = vector.broadcast %16 : vector<1x1xf32> to vector<1x256xf32>
      %20 = arith.subf %12, %19 : vector<1x256xf32>
      %21 = math.exp %20 : vector<1x256xf32>
      %c0_11 = arith.constant 0 : index
      %c0_12 = arith.constant 0 : index
      %22 = vector.load %arg13[%c0_11, %c0_12] : memref<1x1xf32, #tpu.memory_space<vmem>>, vector<1x1xf32>
      tpu.vector_store %arg13[%c0_11, %c0_12], %16 {strides = array<i32>} : memref<1x1xf32, #tpu.memory_space<vmem>>, vector<1x1xf32>,
      %c0_13 = arith.constant 0 : index
      %c0_14 = arith.constant 0 : index
      %23 = vector.load %arg14[%c0_13, %c0_14] : memref<1x1xf32, #tpu.memory_space<vmem>>, vector<1x1xf32>
      %24 = arith.mulf %23, %18 : vector<1x1xf32>
      %cst_15 = arith.constant dense<0.000000e+00> : vector<1xf32>
      %25 = vector.multi_reduction <add>, %21, %cst_15 [1] : vector<1x256xf32> to vector<1xf32>
      %26 = vector.shape_cast %25 : vector<1xf32> to vector<1x1xf32>
      %27 = arith.addf %24, %26 : vector<1x1xf32>
      %c0_16 = arith.constant 0 : index
      %c0_17 = arith.constant 0 : index
      %28 = vector.load %arg14[%c0_16, %c0_17] : memref<1x1xf32, #tpu.memory_space<vmem>>, vector<1x1xf32>
      tpu.vector_store %arg14[%c0_16, %c0_17], %27 {strides = array<i32>} : memref<1x1xf32, #tpu.memory_space<vmem>>, vector<1x1xf32>,
      %cst_18 = arith.constant 1.000000e+00 : f32
      %29 = vector.broadcast %cst_18 : f32 to vector<1x256xf32>
      %30 = tpu.concatenate %21, %29 in 0 : vector<1x256xf32>, vector<1x256xf32> -> vector<2x256xf32>
      %cst_19 = arith.constant dense<0.000000e+00> : vector<4x2xf32>
      %31 = tpu.matmul %10, %30, %cst_19 {dimension_numbers = #tpu.dot_dimension_numbers<[1], [1], [0], [0], [0, 0, 1, 0], [], []>} : vector<4x256xf32>, vector<2x256xf32>, vector<4x2xf32> -> vector<4x2xf32>
      %cst_20 = arith.constant 1.000000e+00 : f32
      %32 = vector.broadcast %cst_20 : f32 to vector<1x1xf32>
      %33 = tpu.concatenate %18, %32 in 1 : vector<1x1xf32>, vector<1x1xf32> -> vector<1x2xf32>
      %c0_21 = arith.constant 0 : index
      %c0_22 = arith.constant 0 : index
      %34 = vector.load %arg12[%c0_21, %c0_22] : memref<4x2xf32, #tpu.memory_space<vmem>>, vector<4x2xf32>
      %35 = vector.broadcast %33 : vector<1x2xf32> to vector<4x2xf32>
      %36 = arith.mulf %34, %35 : vector<4x2xf32>
      %37 = arith.addf %36, %31 : vector<4x2xf32>
      %c0_23 = arith.constant 0 : index
      %c0_24 = arith.constant 0 : index
      %38 = vector.load %arg12[%c0_23, %c0_24] : memref<4x2xf32, #tpu.memory_space<vmem>>, vector<4x2xf32>
      tpu.vector_store %arg12[%c0_23, %c0_24], %37 {strides = array<i32>} : memref<4x2xf32, #tpu.memory_space<vmem>>, vector<4x2xf32>,
      %c0_i32_25 = arith.constant 0 : i32
      %39 = arith.cmpi eq, %arg2, %c0_i32_25 : i32
      %40 = arith.extui %39 : i1 to i32
      %c0_i32_26 = arith.constant 0 : i32
      %41 = arith.cmpi ne, %40, %c0_i32_26 : i32
      scf.if %41 {
        %c0_27 = arith.constant 0 : index
        %c0_28 = arith.constant 0 : index
        %42 = vector.load %arg12[%c0_27, %c0_28] : memref<4x2xf32, #tpu.memory_space<vmem>>, vector<4x1xf32>
        %c0_29 = arith.constant 0 : index
        %c0_30 = arith.constant 0 : index
        %43 = vector.load %arg14[%c0_29, %c0_30] : memref<1x1xf32, #tpu.memory_space<vmem>>, vector<1x1xf32>
        %44 = vector.broadcast %43 : vector<1x1xf32> to vector<4x1xf32>
        %45 = arith.divf %42, %44 : vector<4x1xf32>
        %c0_31 = arith.constant 0 : index
        %c1 = arith.constant 1 : index
        %46 = vector.load %arg12[%c0_31, %c1] : memref<4x2xf32, #tpu.memory_space<vmem>>, vector<4x1xf32>
        %cst_32 = arith.constant 3.906250e-03 : f32
        %47 = vector.broadcast %cst_32 : f32 to vector<4x1xf32>
        %48 = arith.mulf %46, %47 : vector<4x1xf32>
        %c0_33 = arith.constant 0 : index
        %c0_34 = arith.constant 0 : index
        %49 = vector.load %arg10[%c0_33, %c0_34] : memref<2x3xf32, #tpu.memory_space<vmem>>, vector<2x1xf32>
        %c0_35 = arith.constant 0 : index
        %c1_36 = arith.constant 1 : index
        %50 = vector.load %arg10[%c0_35, %c1_36] : memref<2x3xf32, #tpu.memory_space<vmem>>, vector<2x1xf32>
        %c0_37 = arith.constant 0 : index
        %c2 = arith.constant 2 : index
        %51 = vector.load %arg10[%c0_37, %c2] : memref<2x3xf32, #tpu.memory_space<vmem>>, vector<2x1xf32>
        %c0_38 = arith.constant 0 : index
        %c0_39 = arith.constant 0 : index
        %52 = vector.load %arg9[%c0_38, %c0_39] : memref<4x3xf32, #tpu.memory_space<vmem>>, vector<4x1xf32>
        %c0_40 = arith.constant 0 : index
        %c1_41 = arith.constant 1 : index
        %53 = vector.load %arg9[%c0_40, %c1_41] : memref<4x3xf32, #tpu.memory_space<vmem>>, vector<4x1xf32>
        %c0_42 = arith.constant 0 : index
        %c2_43 = arith.constant 2 : index
        %54 = vector.load %arg9[%c0_42, %c2_43] : memref<4x3xf32, #tpu.memory_space<vmem>>, vector<4x1xf32>
        %c0_44 = arith.constant 0 : index
        %c0_45 = arith.constant 0 : index
        %55 = vector.load %arg5[%c0_44, %c0_45] : memref<2x4xf32, #tpu.memory_space<vmem>>, vector<2x4xf32>
        %cst_46 = arith.constant dense<0.000000e+00> : vector<2x1xf32>
        %56 = tpu.matmul %55, %45, %cst_46 {dimension_numbers = #tpu.dot_dimension_numbers<[1], [0], [0], [1], [0, 0, 1, 1], [], []>} : vector<2x4xf32>, vector<4x1xf32>, vector<2x1xf32> -> vector<2x1xf32>
        %57 = arith.addf %56, %49 : vector<2x1xf32>
        %c0_47 = arith.constant 0 : index
        %c0_48 = arith.constant 0 : index
        %58 = vector.load %arg6[%c0_47, %c0_48] : memref<4x2xf32, #tpu.memory_space<vmem>>, vector<4x2xf32>
        %cst_49 = arith.constant dense<0.000000e+00> : vector<4x1xf32>
        %59 = tpu.matmul %58, %57, %cst_49 {dimension_numbers = #tpu.dot_dimension_numbers<[1], [0], [0], [1], [0, 0, 1, 1], [], []>} : vector<4x2xf32>, vector<2x1xf32>, vector<4x1xf32> -> vector<4x1xf32>
        %60 = arith.addf %59, %52 : vector<4x1xf32>
        %cst_50 = arith.constant dense<0.000000e+00> : vector<1xf32>
        %61 = vector.multi_reduction <add>, %60, %cst_50 [0] : vector<4x1xf32> to vector<1xf32>
        %62 = vector.shape_cast %61 : vector<1xf32> to vector<1x1xf32>
        %cst_51 = arith.constant 4.000000e+00 : f32
        %63 = vector.broadcast %cst_51 : f32 to vector<1x1xf32>
        %64 = arith.divf %62, %63 : vector<1x1xf32>
        %65 = vector.broadcast %64 : vector<1x1xf32> to vector<4x1xf32>
        %66 = arith.subf %60, %65 : vector<4x1xf32>
        %67 = arith.mulf %66, %66 : vector<4x1xf32>
        %cst_52 = arith.constant dense<0.000000e+00> : vector<1xf32>
        %68 = vector.multi_reduction <add>, %67, %cst_52 [0] : vector<4x1xf32> to vector<1xf32>
        %69 = vector.shape_cast %68 : vector<1xf32> to vector<1x1xf32>
        %cst_53 = arith.constant 4.000000e+00 : f32
        %70 = vector.broadcast %cst_53 : f32 to vector<1x1xf32>
        %71 = arith.divf %69, %70 : vector<1x1xf32>
        %72 = vector.broadcast %64 : vector<1x1xf32> to vector<4x1xf32>
        %73 = arith.subf %60, %72 : vector<4x1xf32>
        %cst_54 = arith.constant 9.99999974E-6 : f32
        %74 = vector.broadcast %cst_54 : f32 to vector<1x1xf32>
        %75 = arith.addf %71, %74 : vector<1x1xf32>
        %76 = math.rsqrt %75 : vector<1x1xf32>
        %77 = vector.broadcast %76 : vector<1x1xf32> to vector<4x1xf32>
        %78 = arith.mulf %73, %77 : vector<4x1xf32>
        %79 = arith.mulf %78, %53 : vector<4x1xf32>
        %80 = arith.addf %79, %54 : vector<4x1xf32>
        %81 = arith.negf %80 : vector<4x1xf32>
        %82 = math.exp %81 : vector<4x1xf32>
        %cst_55 = arith.constant 1.000000e+00 : f32
        %83 = vector.broadcast %cst_55 : f32 to vector<4x1xf32>
        %84 = arith.addf %83, %82 : vector<4x1xf32>
        %85 = arith.divf %83, %84 : vector<4x1xf32>
        %c0_56 = arith.constant 0 : index
        %c0_57 = arith.constant 0 : index
        %86 = vector.load %arg15[%c0_56, %c0_57] : memref<4x1xf32, #tpu.memory_space<vmem>>, vector<4x1xf32>
        tpu.vector_store %arg15[%c0_56, %c0_57], %85 {strides = array<i32>} : memref<4x1xf32, #tpu.memory_space<vmem>>, vector<4x1xf32>,
        %c0_58 = arith.constant 0 : index
        %c0_59 = arith.constant 0 : index
        %87 = vector.load %arg7[%c0_58, %c0_59] : memref<2x4xf32, #tpu.memory_space<vmem>>, vector<2x4xf32>
        %cst_60 = arith.constant dense<0.000000e+00> : vector<2x1xf32>
        %88 = tpu.matmul %87, %48, %cst_60 {dimension_numbers = #tpu.dot_dimension_numbers<[1], [0], [0], [1], [0, 0, 1, 1], [], []>} : vector<2x4xf32>, vector<4x1xf32>, vector<2x1xf32> -> vector<2x1xf32>
        %89 = arith.addf %88, %50 : vector<2x1xf32>
        %cst_61 = arith.constant dense<0xFF800000> : vector<1xf32>
        %90 = vector.multi_reduction <maximumf>, %89, %cst_61 [0] : vector<2x1xf32> to vector<1xf32>
        %91 = vector.shape_cast %90 : vector<1xf32> to vector<1x1xf32>
        %92 = vector.broadcast %91 : vector<1x1xf32> to vector<2x1xf32>
        %93 = arith.subf %89, %92 : vector<2x1xf32>
        %94 = math.exp %93 : vector<2x1xf32>
        %cst_62 = arith.constant dense<0.000000e+00> : vector<1xf32>
        %95 = vector.multi_reduction <add>, %94, %cst_62 [0] : vector<2x1xf32> to vector<1xf32>
        %96 = vector.shape_cast %95 : vector<1xf32> to vector<1x1xf32>
        %97 = vector.broadcast %96 : vector<1x1xf32> to vector<2x1xf32>
        %98 = arith.divf %94, %97 : vector<2x1xf32>
        %c0_63 = arith.constant 0 : index
        %c0_64 = arith.constant 0 : index
        %99 = vector.load %arg8[%c0_63, %c0_64] : memref<2x4xf32, #tpu.memory_space<vmem>>, vector<2x4xf32>
        %100 = vector.broadcast %98 : vector<2x1xf32> to vector<2x4xf32>
        %101 = arith.mulf %100, %99 : vector<2x4xf32>
        %cst_65 = arith.constant dense<0.000000e+00> : vector<4xf32>
        %102 = vector.multi_reduction <add>, %101, %cst_65 [0] : vector<2x4xf32> to vector<4xf32>
        %103 = vector.shape_cast %102 : vector<4xf32> to vector<1x4xf32>
        %c0_66 = arith.constant 0 : index
        %c0_67 = arith.constant 0 : index
        %104 = vector.load %arg16[%c0_66, %c0_67] : memref<1x4xf32, #tpu.memory_space<vmem>>, vector<1x4xf32>
        tpu.vector_store %arg16[%c0_66, %c0_67], %103 {strides = array<i32>} : memref<1x4xf32, #tpu.memory_space<vmem>>, vector<1x4xf32>,
        %105 = arith.mulf %98, %51 : vector<2x1xf32>
        %cst_68 = arith.constant dense<0.000000e+00> : vector<1xf32>
        %106 = vector.multi_reduction <add>, %105, %cst_68 [0] : vector<2x1xf32> to vector<1xf32>
        %107 = vector.shape_cast %106 : vector<1xf32> to vector<1x1xf32>
        %c0_69 = arith.constant 0 : index
        %c0_70 = arith.constant 0 : index
        %108 = vector.load %arg17[%c0_69, %c0_70] : memref<1x1xf32, #tpu.memory_space<vmem>>, vector<1x1xf32>
        tpu.vector_store %arg17[%c0_69, %c0_70], %107 {strides = array<i32>} : memref<1x1xf32, #tpu.memory_space<vmem>>, vector<1x1xf32>,
      } else {
      }
    } else {
    }
    %c1_i32 = arith.constant 1 : i32
    %3 = arith.cmpi eq, %arg1, %c1_i32 : i32
    %4 = arith.extui %3 : i1 to i32
    %c0_i32_1 = arith.constant 0 : i32
    %5 = arith.cmpi ne, %4, %c0_i32_1 : i32
    scf.if %5 {
      %c0 = arith.constant 0 : index
      %c0_2 = arith.constant 0 : index
      %c0_3 = arith.constant 0 : index
      %6 = vector.load %arg3[%c0, %c0_2, %c0_3] : memref<1x4x256xf32, #tpu.memory_space<vmem>>, vector<1x4x256xf32>
      %7 = vector.shape_cast %6 : vector<1x4x256xf32> to vector<4x256xf32>
      %c0_4 = arith.constant 0 : index
      %c0_5 = arith.constant 0 : index
      %8 = vector.load %arg16[%c0_4, %c0_5] : memref<1x4xf32, #tpu.memory_space<vmem>>, vector<1x4xf32>
      %cst = arith.constant dense<0.000000e+00> : vector<1x256xf32>
      %9 = tpu.matmul %8, %7, %cst {dimension_numbers = #tpu.dot_dimension_numbers<[1], [0], [0], [1], [0, 0, 1, 1], [], []>} : vector<1x4xf32>, vector<4x256xf32>, vector<1x256xf32> -> vector<1x256xf32>
      %c0_6 = arith.constant 0 : index
      %c0_7 = arith.constant 0 : index
      %10 = vector.load %arg17[%c0_6, %c0_7] : memref<1x1xf32, #tpu.memory_space<vmem>>, vector<1x1xf32>
      %11 = vector.broadcast %10 : vector<1x1xf32> to vector<1x256xf32>
      %12 = arith.addf %9, %11 : vector<1x256xf32>
      %13 = arith.negf %12 : vector<1x256xf32>
      %14 = math.exp %13 : vector<1x256xf32>
      %cst_8 = arith.constant 1.000000e+00 : f32
      %15 = vector.broadcast %cst_8 : f32 to vector<1x256xf32>
      %16 = arith.addf %15, %14 : vector<1x256xf32>
      %17 = arith.divf %15, %16 : vector<1x256xf32>
      %c0_9 = arith.constant 0 : index
      %c0_10 = arith.constant 0 : index
      %18 = vector.load %arg15[%c0_9, %c0_10] : memref<4x1xf32, #tpu.memory_space<vmem>>, vector<4x1xf32>
      %19 = vector.broadcast %18 : vector<4x1xf32> to vector<4x256xf32>
      %20 = arith.mulf %7, %19 : vector<4x256xf32>
      %21 = vector.broadcast %17 : vector<1x256xf32> to vector<4x256xf32>
      %22 = arith.mulf %7, %21 : vector<4x256xf32>
      %23 = arith.addf %20, %22 : vector<4x256xf32>
      %c0_11 = arith.constant 0 : index
      %c0_12 = arith.constant 0 : index
      %c0_13 = arith.constant 0 : index
      %24 = vector.load %arg11[%c0_11, %c0_12, %c0_13] : memref<1x4x256xf32, #tpu.memory_space<vmem>>, vector<1x4x256xf32>
      %25 = vector.shape_cast %24 : vector<1x4x256xf32> to vector<4x256xf32>
      %26 = vector.shape_cast %23 : vector<4x256xf32> to vector<1x4x256xf32>
      tpu.vector_store %arg11[%c0_11, %c0_12, %c0_13], %26 {strides = array<i32>} : memref<1x4x256xf32, #tpu.memory_space<vmem>>, vector<1x4x256xf32>,
    } else {
    }
    return
  }
  func.func @transform_0(%arg0: i32, %arg1: i32, %arg2: i32) -> (i32, i32, i32) {
    %c0_i32 = arith.constant 0 : i32
    %c0_i32_0 = arith.constant 0 : i32
    return %arg0, %c0_i32, %arg2 : i32, i32, i32
  }
  func.func @transform_1(%arg0: i32, %arg1: i32, %arg2: i32) -> (i32, i32) {
    %c0_i32 = arith.constant 0 : i32
    %c0_i32_0 = arith.constant 0 : i32
    %c0_i32_1 = arith.constant 0 : i32
    return %c0_i32, %c0_i32_0 : i32, i32
  }
  func.func @transform_2(%arg0: i32, %arg1: i32, %arg2: i32) -> (i32, i32) {
    %c0_i32 = arith.constant 0 : i32
    %c0_i32_0 = arith.constant 0 : i32
    %c0_i32_1 = arith.constant 0 : i32
    return %c0_i32, %c0_i32_0 : i32, i32
  }
  func.func @transform_3(%arg0: i32, %arg1: i32, %arg2: i32) -> (i32, i32) {
    %c0_i32 = arith.constant 0 : i32
    %c0_i32_0 = arith.constant 0 : i32
    %c0_i32_1 = arith.constant 0 : i32
    return %c0_i32, %c0_i32_0 : i32, i32
  }
  func.func @transform_4(%arg0: i32, %arg1: i32, %arg2: i32) -> (i32, i32) {
    %c0_i32 = arith.constant 0 : i32
    %c0_i32_0 = arith.constant 0 : i32
    %c0_i32_1 = arith.constant 0 : i32
    return %c0_i32, %c0_i32_0 : i32, i32
  }
  func.func @transform_5(%arg0: i32, %arg1: i32, %arg2: i32) -> (i32, i32) {
    %c0_i32 = arith.constant 0 : i32
    %c0_i32_0 = arith.constant 0 : i32
    %c0_i32_1 = arith.constant 0 : i32
    return %c0_i32, %c0_i32_0 : i32, i32
  }
  func.func @transform_6(%arg0: i32, %arg1: i32, %arg2: i32) -> (i32, i32) {
    %c0_i32 = arith.constant 0 : i32
    %c0_i32_0 = arith.constant 0 : i32
    %c0_i32_1 = arith.constant 0 : i32
    return %c0_i32, %c0_i32_0 : i32, i32
  }
  func.func @transform_7(%arg0: i32, %arg1: i32, %arg2: i32) -> (i32, i32) {
    %c0_i32 = arith.constant 0 : i32
    %c0_i32_0 = arith.constant 0 : i32
    %c0_i32_1 = arith.constant 0 : i32
    return %c0_i32, %c0_i32_0 : i32, i32
  }
  func.func @transform_8(%arg0: i32, %arg1: i32, %arg2: i32) -> (i32, i32, i32) {
    %0 = arith.muli %arg2, %arg1 : i32
    %c0_i32 = arith.constant 0 : i32
    %c0_i32_0 = arith.constant 0 : i32
    return %arg0, %c0_i32, %0 : i32, i32, i32
  }
}

</mosaic_0001>

<bundles_post_ra>
// kernel: tpu_custom_call.1
= control target key start
LH: loop header
LB: loop body
LE: loop exit
PB: predicated region body
PF: predicated region fallthrough
CT: control target
= control target key end

     0   :  { %13 = vsyncpa [#allocation9], 0  ;;  %s1737_s0 = inlined_call_operand.hbm [shape: f32[2,4,256], index: 0, kind: input, shape index: {}]   ;;  %s1738_s1 = inlined_call_operand.vmem [shape: f32[1,4], index: 1, kind: input, shape index: {}]   ;;  %s1739_s2 = inlined_call_operand.vmem [shape: f32[2,4], index: 2, kind: input, shape index: {}]   ;;  %s1740_s3 = inlined_call_operand.vmem [shape: f32[4,2], index: 3, kind: input, shape index: {}]   ;;  %s1741_s4 = inlined_call_operand.vmem [shape: f32[2,4], index: 4, kind: input, shape index: {}]   ;;  %s1742_s5 = inlined_call_operand.vmem [shape: f32[2,4], index: 5, kind: input, shape index: {}]   ;;  %s1743_s6 = inlined_call_operand.vmem [shape: f32[4,3], index: 6, kind: input, shape index: {}]   ;;  %s1744_s7 = inlined_call_operand.vmem [shape: f32[2,3], index: 7, kind: input, shape index: {}]   ;;  %s1745_s8 = inlined_call_operand.hbm [shape: f32[2,4,256], index: 8, kind: output, shape index: {}]  }
   0x1   :  { %15 = vsyncpa [#allocation9 + $0x1], 0 }
   0x2   :  { %16 = vsyncpa [#allocation10], 0 }
   0x3   :  { %18 = vsyncpa [#allocation10 + $0x1], 0  ;;  %s1516_s27 = smov 0   ;;  %s1518_s28 = smov 0  }
   0x4   :  { %s1520_s29 = smov 0   ;;  %s1522_s30 = smov 0  }
   0x5   :  { %s1524_s9 = smov 0   ;;  %s1526_s10 = smov 0  }
   0x6   :  { %s1528_s11 = smov 0   ;;  %s1530_s12 = smov 0  }
   0x7 LB: > { %1749 = sst [smem:[#allocation14_spill]] %s1430_s27  ;;  %s1160_s13 = sadd.s32 4294967295, %s1458_s12   ;;  %s1458_s12 = sphi %s1530_s12, %s24_s12   ;;  %s1454_s11 = sphi %s1528_s11, %s1767_s11   ;;  %s1450_s10 = sphi %s1526_s10, %s1761_s10   ;;  %s1446_s9 = sphi %s1524_s9, %s1766_s9   ;;  %s1442_s30 = sphi %s1522_s30, %s1760_s30   ;;  %s1438_s29 = sphi %s1520_s29, %s1765_s29   ;;  %s1434_s28 = sphi %s1518_s28, %s1764_s28   ;;  %s1430_s27 = sphi %s1516_s27, %s1763_s27  }
   0x8   : > { %1750 = sst [smem:[#allocation15_spill]] %s1450_s10  ;;  %s1161_s14 = sadd.s32 4294967294, %s1458_s12  }
   0x9   : > { %s39_s15 = sadd.s32 1, %s1450_s10  ;;  %s43_s16 = sadd.s32 1, %s1454_s11 }
   0xa   : > { %p41_p0 = scmp.ge.s32.totalorder %s39_s15, 2  ;;  %s52_s17 = sadd.s32 1, %s1438_s29 }
   0xb   : > { %p59_p1 = scmp.ne.s32.totalorder %s1438_s29, %s1434_s28  ;;  %p60_p2 = scmp.eq.s32.totalorder %s1458_s12, 0 }
   0xc   : > { %s1769_s15 = smov (%p41_p0, %s39_s15), 0  ;;  %s1771_s16 = smov (!%p41_p0, %s43_s16), %s1454_s11 }
   0xd   : > { %1751 = sst [smem:[#allocation16_spill]] %s1769_s15  ;;  %p1567_p3 = por %p60_p2, %p59_p1 }
   0xe   : > { %p65_p4 = scmp.ne.s32.totalorder %s1434_s28, %s1430_s27  ;;  %p45_p5 = scmp.ge.s32.totalorder %s1771_s16, 2 }
   0xf   : > { %p66_p6 = scmp.eq.s32.totalorder %s1160_s13, 0  ;;  %p240_p7 = scmp.eq.s32.totalorder %s1160_s13, 3 }
  0x10   : > { %p246_p8 = scmp.eq.s32.totalorder %s1161_s14, 3  ;;  %s1773_s16 = smov (%p45_p5, %s1771_s16), 0 }
  0x11   : > { %1753 = sst [smem:[#allocation17_spill]] %s1773_s16  ;;  %p1575_p9 = por %p66_p6, %p65_p4 }
  0x12   : > { %p1579_p10 = por %p240_p7, %p59_p1  ;;  %s47_s21 = ssub.s32 %s1454_s11, %s1773_s16 }
  0x13   : > { %p1585_p11 = por %p246_p8, %p65_p4  ;;  %p50_p12 = scmp.eq.s32.totalorder %s47_s21, 0 }
  0x14   : > { %p1228_p13 = scmp.lt.s32.totalorder %s1458_s12, 4  ;;  %s287_s23 = sand.u32 1, %s1438_s29  }
  0x15   : > { %s1756_s22 = scalar_select %p1585_p11, 1, 0 }
  0x16   : > { %s1592_s24 = scalar_select %p50_p12, %s1438_s29, %s52_s17  }
  0x17   : > { %s1164_s25 = sshll.u32 %s287_s23, 3  ;;  %s1193_s26 = sshll.u32 %s1454_s11, 7 }
  0x18   : > { %s299_s15 = scalar_lea.hbm %s1737_s0, %s1193_s26  ;;  %s291_s10 = scalar_lea.vmem [#allocation8], %s1164_s25 }
  0x19   : > { %s301_s27 = sshll.u32 %s291_s10, 4  ;;  %p1600_p0 = pnand %p1228_p13, %p1567_p3  ;;  %s302_s27 = int_to_ptr.vmem [resolvable:$true] %s301_s27 }
  0x1a   : > { %p1167_p1 = scmp.ge.s32.totalorder %s1458_s12, 1  ;;  %p306_p2 = scmp.lt.s32.totalorder %s1458_s12, 5 }
  0x1b   : > { %s288_s21 = scalar_lea.sflag [#allocation9], %s287_s23  ;;  %p1336_p4 = pneg %p1600_p0 }
  0x1c   : > { %s1347_s17 = scalar_lea.vmem %s302_s27, 128  ;;  %s1460_s13 = smov [#allocation8]  }
  0x1d   : > { %p1348_p5 = scmp.ne.s32.totalorder %s302_s27, %s1347_s17  ;;  %s1352_s26 = sshll.u32 %s1460_s13, 4  ;;  %s1353_s26 = int_to_ptr.vmem [resolvable:$false] %s1352_s26 }
  0x1e   : > { %s1354_s10 = scalar_lea.vmem %s1353_s26, 256  ;;  %p1355_p8 = scmp.lt.s32.totalorder %s302_s27, %s1353_s26 }
  0x1f   : > { %p1350_p6 = pnand %p1348_p5, %p1336_p4  ;;  %p1356_p12 = scmp.lt.s32.totalorder %s1354_s10, %s1347_s17 }
  0x21   : > { %p1351_p7 = pneg %p1350_p6  ;;  %p1357_p3 = por %p1356_p12, %p1355_p8 }
  0x23   : > { %p1358_p13 = pnand %p1357_p3, %p1351_p7 }
  0x25   : > { %1361 = shalt.err (!%p1358_p13)
}
  0x26   : > { %1223 = dma.hbm_to_vmem [thread:$0]  (!%p1600_p0), %s299_s15, 128, %s302_s27, %s288_s21  }
  0x27   : > { %p307_p11 = pnand %p1167_p1, %p306_p2 }
  0x28   : > { %s1615_s18 = sand.u32 (!%p307_p11), 1, %s1434_s28  }
  0x29   : > { %310 = sbr.rel (%p307_p11) target bundleno = 1540 (0x604), region = 52  ;;  %s1168_s23 = sshll.u32 (!%p307_p11), %s1615_s18, 3 }
  0x2a   : > { %s313_s25 = scalar_lea.sflag (!%p307_p11), [#allocation9], %s1615_s18  ;;  %s1619_s14 = scalar_lea.vmem (!%p307_p11), [#allocation8], %s1168_s23 }
  0x2e   : > { %1421 = dma.done.wait (%p1575_p9), %s313_s25, 128  }
  0x2f   : > { %1423 = vsyncadd (%p1575_p9), %s313_s25, 4294967168  ;;  %s1625_s27 = scalar_lea.vmem [#allocation11], %s1168_s23  ;;  %p1170_p0 = scmp.ne.s32.totalorder %s1442_s30, 0 }
  0x30   : > { %s1465_s17 = smov (!%p1170_p0), 127   ;;  %s1466_s21 = smov (!%p1170_p0), 126  }
  0x31   : > { %355 = sbr.rel (%p1170_p0) target bundleno = 1267 (0x4f3), region = 60 }
  0x36   : > { %v365_v0 = vld [vmem:[%s1619_s14] sm:$0xff]  ;;  %vm373_vm0 = vcmask 1043456   ;;  %v1461_v2 = vmov 0.0   ;;  %v366_v3 = vld [vmem:[%s1738_s1] sm:$0x1]  ;;  %vm369_vm1 = vcmask 31744   ;;  %v465_v15 = vlaneseq }
  0x37   : > { %v368_v1 = vcombine.high %v365_v0, %v365_v0  ;;  %442 = vmatprep.mubr.f32.mxu0 %v1461_v2  ;;  %vm450_vm2 = vcmask 1040384   ;;  %vm360_vm3 = vcmask 0   ;;  %v1462_v9 = vmov -1e+30   ;;  %v586_v49 = vld [vmem:[%s1739_s2] sm:$0x3] }
  0x38   : > { %361 = vst.msk [vmem:[#allocation3] sm:$0x1] %vm360_vm3, %v1462_v9  ;;  %362 = vst.msk [vmem:[#allocation4] sm:$0x1] %vm360_vm3, %v1461_v2  ;;  %v1463_v10 = vmov 0   ;;  %vm363_vm4 = vcmask 11264  }
  0x39   : > { %1171 = vmatprep.subr.msk.mxu0 %vm373_vm0, %v368_v1  ;;  %553 = vmatprep.mubr.f32.mxu1 %v368_v1  ;;  %364 = vst.msk [vmem:[#allocation2] sm:$0xf] %vm363_vm4, %v1461_v2  ;;  %v466_v16 = vshrl.u32 %v465_v15, 7  ;;  %vm1464_vm5 = vmmov 0   ;;  %vm559_vm6 = vcmask 7168   ;;  %vm668_vm7 = vcmask 1041408  }
  0x3a   : > { %1172 = vmatpush1.msk.msra.mxu0 %vm373_vm0, %v365_v0  ;;  %1303 = vset.pattern.permute.xlu0 %v1463_v10  ;;  %v584_v50 = vld [vmem:[%s1744_s7] sm:$0x3]  ;;  %vm664_vm8 = vcmask 15360   ;;  %vm864_vm9 = vcmask 1024   ;;  %vm742_vm10 = vcmask 3072   ;;  %vm891_vm11 = vcmask 25600  }
  0x3b   : > { %1173 = vmatmul.mubr.msk.f32.vlgmr.msra.gmra.mxu0 %vm369_vm1, %v366_v3  ;;  %1201 = vmatprep.subr.mxu0 %v1461_v2  ;;  %v467_v17 = vsub.s32 0, %v466_v16  ;;  %v781_v51 = vld [vmem:[%s1741_s4] sm:$0x3]  ;;  %vm899_vm12 = vcmask 24576  }
  0x3c   : > { %1304 = vset.pattern.permute.xlu1 %v1463_v10  ;;  %1203 = vmatprep.mubr.msk.f32.mxu0 %vm1464_vm5, %v1461_v2  ;;  %v663_v55 = vld [vmem:[%s1740_s3] sm:$0xf] }
  0x3d   : > { %v585_v57 = vld [vmem:[%s1743_s6] sm:$0xf] }
  0x3f   : > { %v449_v11 = vld [vmem:[#allocation3] sm:$0x1]  ;;  %v477_v33 = vld [vmem:[#allocation4] sm:$0x1] }
  0x40   : > { %v561_v40 = vld [vmem:[#allocation2] sm:$0xf] }
  0xfb   : > { %v444_v4 = vpop.f32.mrf.mxu0 }
  0xfc   : > { %v451_v6 = vsel %vm450_vm2, %v444_v4, -inf }
  0xfd   : > { %v446_v5 = vpop.f32.mrf.mxu0 }
  0xfe   : > { %v452_v7 = vsel %vm450_vm2, %v446_v5, -inf }
  0xff   : > { %v453_v8 = vmax.f32 %v451_v6, %v452_v7 }
 0x101   : > { %454 = vmax.xlane.f32.xlu0 %v453_v8 }
 0x18a   : > { %v455_v12 = vpop.xlane.xlu0 %454 }
 0x18b   : > { %v456_v13 = vmax.f32 %v449_v11, %v455_v12 }
 0x18d   : > { %v457_v14 = vsub.f32 %v449_v11, %v456_v13  ;;  %476 = vst.msk [vmem:[#allocation3] sm:$0x1] %vm360_vm3, %v456_v13  ;;  %462 = vperm.xlu0 %1303, %v456_v13  }
 0x18f   : > { %v458_v31 = vmul.f32 1.442695, %v457_v14 }
 0x208   : > { %v463_v18 = vpop.permute.xlu0 %462 }
 0x209   : > { %v468_v19 = vrot.slane %v463_v18, %v467_v17 }
 0x20b   : > { %v469_v20 = vsub.f32 %v444_v4, %v468_v19  ;;  %v470_v21 = vsub.f32 %v446_v5, %v468_v19 }
 0x20d   : > { %v471_v22 = vmul.f32 1.442695, %v469_v20  ;;  %v473_v23 = vmul.f32 1.442695, %v470_v21 }
 0x20f   : > { %1306 = vpow2.f32 %v471_v22 }
 0x210   : > { %1308 = vpow2.f32 %v473_v23 }
 0x211   : > { %1310 = vpow2.f32 %v458_v31 }
 0x21c   : > { %v1307_v24 = vpop.eup %1306 }
 0x21d   : > { %v1309_v25 = vpop.eup %1308  ;;  %v486_v26 = vsel %vm450_vm2, %v1307_v24, 1.0  ;;  %v479_v27 = vsel %vm450_vm2, %v1307_v24, 0.0 }
 0x21e   : > { %v487_v28 = vsel %vm450_vm2, %v1309_v25, 1.0  ;;  %v480_v29 = vsel %vm450_vm2, %v1309_v25, 0.0  ;;  %v1311_v32 = vpop.eup %1310 }
 0x21f   : > { %519 = vmatprep.subr.mxu1 %v487_v28  ;;  %v481_v30 = vadd.f32 %v480_v29, %v479_v27  ;;  %v478_v34 = vmul.f32 %v1311_v32, %v477_v33  ;;  %v560_v37 = vsel %vm559_vm6, %v1311_v32, 1.0 }
 0x220   : > { %520 = vmatpush1.xpose.msra.mxu1 %v486_v26  ;;  %v565_v39 = vrot.slane %v560_v37, %v467_v17 }
 0x221   : > { %482 = vadd.xlane.f32.xlu1 %v481_v30  ;;  %1206 = vmatprep.subr.mxu1 %v1461_v2 }
 0x222   : > { %v566_v41 = vmul.f32 %v565_v39, %v561_v40 }
 0x223   : > { %554 = vmatmul.mubr.f32.vlgmr.msra.gmra.mxu1 %v365_v0 }
 0x224   : > { %1208 = vmatprep.mubr.msk.f32.mxu1 %vm1464_vm5, %v1461_v2 }
 0x2aa   : > { %v483_v35 = vpop.xlane.xlu1 %482 }
 0x2ab   : > { %v484_v36 = vadd.f32 %v483_v35, %v478_v34 }
 0x2ad   : > { %485 = vst.msk [vmem:[#allocation4] sm:$0x1] %vm360_vm3, %v484_v36 }
 0x2b4   : > { %v1174_v38 = vld [vmem:[#allocation4] ss:$0 sm:$0xff] }
 0x2b5   : > { %1312 = vrcp.f32 %v1174_v38 }
 0x2c2   : > { %v1313_v45 = vpop.eup %1312 }
 0x2e3   : > { %v555_v42 = vpop.f32.mrf.mxu1 }
 0x2e4   : > { %v567_v43 = vadd.f32 %v566_v41, %v555_v42 }
 0x2e5   : > { %v557_v44 = vpop.f32.mrf.mxu1 }
 0x2e6   : > { %569 = vst.msk [vmem:[#allocation2] sm:$0xf] %vm363_vm4, %v567_v43 }
 0x2ed   : > { %v573_v46 = vld [vmem:[#allocation2] sm:$0xf] }
 0x2ee   : > { %v583_v47 = vmul.f32 0.00390625, %v573_v46  ;;  %v582_v48 = vmul.f32 %v1313_v45, %v573_v46 }
 0x2f0   : > { %783 = vrot.lane.b32.xlu1 %v583_v47, %s1465_s17  ;;  %1202 = vmatpush3.msk.msra.mxu0 %vm373_vm0, %v582_v48 }
 0x2f1   : > { %1204 = vmatmul.mubr.msk.f32.vlgmr.msra.gmra.mxu0 %vm369_vm1, %v586_v49  ;;  %1211 = vmatprep.subr.mxu0 %v1461_v2  ;;  %v884_v49 = vld [vmem:[%s1742_s5] sm:$0x3] }
 0x2f2   : > { %1213 = vmatprep.mubr.msk.f32.mxu0 %vm1464_vm5, %v1461_v2 }
 0x2f4   : > { %786 = vrot.lane.b32.xlu1 %v584_v50, %s1465_s17 }
 0x2f8   : > { %766 = vrot.lane.b32.xlu1 %v585_v57, %s1465_s17 }
 0x2fc   : > { %770 = vrot.lane.b32.xlu1 %v585_v57, %s1466_s21 }
 0x362   : > { %v784_v52 = vpop.permute.xlu1 %783 }
 0x363   : > { %1212 = vmatpush3.msk.msra.mxu0 %vm373_vm0, %v784_v52 }
 0x364   : > { %1214 = vmatmul.mubr.msk.f32.vlgmr.msra.gmra.mxu0 %vm369_vm1, %v781_v51 }
 0x366   : > { %v787_v58 = vpop.permute.xlu1 %786 }
 0x36a   : > { %v767_v39 = vpop.permute.xlu1 %766 }
 0x36e   : > { %v771_v42 = vpop.permute.xlu1 %770 }
 0x3b1   : > { %v659_v53 = vpop.f32.mrf.mxu0 }
 0x3b2   : > { %v660_v54 = vadd.f32 %v659_v53, %v584_v50 }
 0x3b3   : > { %v1205_v56 = vpop.f32.mrf.mxu0 }
 0x3b4   : > { %1207 = vmatpush3.msk.msra.mxu1 %vm668_vm7, %v660_v54 }
 0x3b5   : > { %1209 = vmatmul.mubr.msk.f32.vlgmr.msra.gmra.mxu1 %vm664_vm8, %v663_v55 }
 0x424   : > { %v860_v59 = vpop.f32.mrf.mxu0 }
 0x425   : > { %v861_v60 = vadd.f32 %v860_v59, %v787_v58 }
 0x426   : > { %v1215_v61 = vpop.f32.mrf.mxu0 }
 0x427   : > { %v865_v62 = vsel %vm864_vm9, %v861_v60, -inf }
 0x428   : > { %v866_v63 = vrot.slane %v865_v62, 4 }
 0x42a   : > { %v867_v0 = vmax.f32 %v865_v62, %v866_v63 }
 0x42c   : > { %v868_v1 = vrot.slane %v867_v0, 2 }
 0x42e   : > { %v869_v2 = vmax.f32 %v867_v0, %v868_v1 }
 0x430   : > { %v870_v3 = vrot.slane %v869_v2, 1 }
 0x432   : > { %v871_v4 = vmax.f32 %v869_v2, %v870_v3 }
 0x434   : > { %v872_v5 = vsub.f32 %v861_v60, %v871_v4 }
 0x436   : > { %v873_v6 = vmul.f32 1.442695, %v872_v5 }
 0x438   : > { %1314 = vpow2.f32 %v873_v6 }
 0x445   : > { %v1315_v7 = vpop.eup %1314 }
 0x446   : > { %v875_v8 = vsel %vm864_vm9, %v1315_v7, 0.0 }
 0x447   : > { %v876_v9 = vrot.slane %v875_v8, 4 }
 0x449   : > { %v877_v10 = vadd.f32 %v876_v9, %v875_v8 }
 0x44b   : > { %v878_v11 = vrot.slane %v877_v10, 2 }
 0x44d   : > { %v879_v12 = vadd.f32 %v878_v11, %v877_v10 }
 0x44f   : > { %v880_v13 = vrot.slane %v879_v12, 1 }
 0x451   : > { %v881_v14 = vadd.f32 %v880_v13, %v879_v12 }
 0x453   : > { %1316 = vrcp.f32 %v881_v14 }
 0x460   : > { %v1317_v15 = vpop.eup %1316 }
 0x461   : > { %v883_v16 = vmul.f32 %v1317_v15, %v1315_v7 }
 0x463   : > { %887 = vperm.xlu1 %1304, %v883_v16  }
 0x467   : > { %901 = vrot.lane.b32.xlu1 %v584_v50, %s1466_s21 }
 0x475   : > { %v738_v17 = vpop.f32.mrf.mxu1 }
 0x476   : > { %v739_v18 = vadd.f32 %v738_v17, %v585_v57 }
 0x477   : > { %v1210_v19 = vpop.f32.mrf.mxu1 }
 0x478   : > { %v743_v20 = vsel %vm742_vm10, %v739_v18, 0.0 }
 0x479   : > { %v744_v21 = vrot.slane %v743_v20, 4 }
 0x47b   : > { %v745_v22 = vadd.f32 %v744_v21, %v743_v20 }
 0x47d   : > { %v746_v23 = vrot.slane %v745_v22, 2 }
 0x47f   : > { %v747_v24 = vadd.f32 %v746_v23, %v745_v22 }
 0x481   : > { %v748_v25 = vrot.slane %v747_v24, 1 }
 0x483   : > { %v749_v26 = vadd.f32 %v748_v25, %v747_v24 }
 0x485   : > { %v751_v27 = vmul.f32 0.25, %v749_v26 }
 0x487   : > { %v752_v28 = vsub.f32 %v739_v18, %v751_v27 }
 0x489   : > { %v753_v29 = vmul.f32 %v752_v28, %v752_v28 }
 0x48b   : > { %v754_v30 = vsel %vm742_vm10, %v753_v29, 0.0 }
 0x48c   : > { %v755_v31 = vrot.slane %v754_v30, 4 }
 0x48e   : > { %v756_v32 = vadd.f32 %v755_v31, %v754_v30 }
 0x490   : > { %v757_v33 = vrot.slane %v756_v32, 2 }
 0x492   : > { %v758_v34 = vadd.f32 %v757_v33, %v756_v32 }
 0x494   : > { %v759_v35 = vrot.slane %v758_v34, 1 }
 0x496   : > { %v760_v36 = vadd.f32 %v759_v35, %v758_v34 }
 0x498   : > { %v761_v37 = vmul.f32 0.25, %v760_v36 }
 0x49a   : > { %v762_v38 = vadd.f32 1e-05, %v761_v37 }
 0x49c   : > { %1318 = vrsqrt.f32 %v762_v38 }
 0x4a9   : > { %v1319_v40 = vpop.eup %1318 }
 0x4aa   : > { %v764_v41 = vmul.f32 %v1319_v40, %v752_v28 }
 0x4ac   : > { %v769_v43 = vmul.f32 %v767_v39, %v764_v41 }
 0x4ae   : > { %v773_v44 = vadd.f32 %v771_v42, %v769_v43 }
 0x4b0   : > { %v1179_v45 = vmul.f32 -1.442695, %v773_v44 }
 0x4b2   : > { %1320 = vpow2.f32 %v1179_v45 }
 0x4bf   : > { %v1321_v46 = vpop.eup %1320 }
 0x4c0   : > { %v777_v47 = vadd.f32 1.0, %v1321_v46 }
 0x4c2   : > { %1322 = vrcp.f32 %v777_v47 }
 0x4cf   : > { %v1323_v48 = vpop.eup %1322 }
 0x4d0   : > { %780 = vst.msk [vmem:[#allocation5] sm:$0xf] %vm742_vm10, %v1323_v48 }
 0x4de   : > { %v888_v50 = vpop.permute.xlu1 %887 }
 0x4df   : > { %v890_v51 = vmul.f32 %v888_v50, %v884_v49 }
 0x4e1   : > { %v892_v52 = vsel %vm891_vm11, %v890_v51, 0.0 }
 0x4e2   : > { %v893_v53 = vrot.slane %v892_v52, 4  ;;  %v902_v54 = vpop.permute.xlu1 %901 }
 0x4e3   : > { %v904_v55 = vmul.f32 %v902_v54, %v883_v16 }
 0x4e4   : > { %v894_v56 = vadd.f32 %v893_v53, %v892_v52 }
 0x4e5   : > { %v905_v57 = vsel %vm864_vm9, %v904_v55, 0.0 }
 0x4e6   : > { %v895_v58 = vrot.slane %v894_v56, 2  ;;  %v906_v59 = vrot.slane %v905_v57, 4 }
 0x4e8   : > { %v896_v60 = vadd.f32 %v895_v58, %v894_v56  ;;  %v907_v61 = vadd.f32 %v906_v59, %v905_v57 }
 0x4ea   : > { %v897_v62 = vrot.slane %v896_v60, 1  ;;  %v908_v63 = vrot.slane %v907_v61, 2 }
 0x4ec   : > { %v898_v0 = vadd.f32 %v897_v62, %v896_v60  ;;  %v909_v1 = vadd.f32 %v908_v63, %v907_v61 }
 0x4ee   : > { %900 = vst.msk [vmem:[#allocation6] sm:$0x1] %vm899_vm12, %v898_v0  ;;  %v910_v2 = vrot.slane %v909_v1, 1 }
 0x4f0   : > { %v911_v3 = vadd.f32 %v910_v2, %v909_v1 }
 0x4f2   : > { %912 = vst.msk [vmem:[#allocation7] sm:$0x1] %vm360_vm3, %v911_v3 }
 0x4f3 PF: > { %p1182_p9 = scmp.ne.s32.totalorder %s1442_s30, 1 }
 0x4f5   : > { %916 = sbr.rel (%p1182_p9) target bundleno = 1517 (0x5ed), region = 72 }
 0x4fa   : > { %v917_v4 = vld [vmem:[%s1619_s14] sm:$0xff]  ;;  %vm935_vm13 = vcmask 1043456   ;;  %v1467_v6 = vmov 0.0   ;;  %v919_v7 = vld [vmem:[#allocation7] sm:$0x1]  ;;  %vm931_vm14 = vcmask 31744   ;;  %v925_v11 = vlaneseq }
 0x4fb   : > { %v930_v5 = vcombine.high %v917_v4, %v917_v4  ;;  %1004 = vmatprep.mubr.f32.mxu0 %v1467_v6  ;;  %v918_v8 = vld [vmem:[#allocation6] sm:$0x1]  ;;  %v1468_v9 = vmov 0   ;;  %v1023_v10 = vld [vmem:[#allocation5] sm:$0xf] }
 0x4fc   : > { %1324 = vset.pattern.permute.xlu0 %v1468_v9  ;;  %v926_v12 = vshrl.u32 %v925_v11, 7  ;;  %v1469_v26 = vmov 839922192  }
 0x4fd   : > { %1183 = vmatprep.subr.msk.mxu0 %vm935_vm13, %v930_v5  ;;  %922 = vperm.xlu0 %1324, %v919_v7   ;;  %v1029_v27 = vunpack.c.l.s4 %v1469_v26 }
 0x4fe   : > { %1184 = vmatpush1.msk.msra.mxu0 %vm935_vm13, %v917_v4  ;;  %v927_v13 = vsub.s32 0, %v926_v12 }
 0x4ff   : > { %1185 = vmatmul.mubr.msk.f32.vlgmr.msra.gmra.mxu0 %vm931_vm14, %v918_v8  ;;  %v1030_v28 = vunpack.c.0.s8 %v1029_v27 }
 0x501   : > { %1026 = vperm.xlu0 %1324, %v1023_v10   ;;  %v1033_v29 = vsub.s32 %v1030_v28, %v926_v12 }
 0x578   : > { %v923_v14 = vpop.permute.xlu0 %922 }
 0x579   : > { %v928_v15 = vrot.slane %v923_v14, %v927_v13 }
 0x57c   : > { %v1027_v31 = vpop.permute.xlu0 %1026 }
 0x57d   : > { %v1034_v33 = vrot.slane %v1027_v31, %v1033_v29 }
 0x57f   : > { %v1036_v37 = vmul.f32 %v1034_v33, %v917_v4 }
 0x5bf   : > { %v1006_v16 = vpop.f32.mrf.mxu0 }
 0x5c0   : > { %v1007_v17 = vadd.f32 %v1006_v16, %v928_v15 }
 0x5c1   : > { %v1008_v18 = vpop.f32.mrf.mxu0 }
 0x5c2   : > { %v1186_v19 = vmul.f32 -1.442695, %v1007_v17  ;;  %v1009_v20 = vadd.f32 %v1008_v18, %v928_v15 }
 0x5c4   : > { %1326 = vpow2.f32 %v1186_v19  ;;  %v1187_v21 = vmul.f32 -1.442695, %v1009_v20 }
 0x5c6   : > { %1328 = vpow2.f32 %v1187_v21 }
 0x5d1   : > { %v1327_v22 = vpop.eup %1326 }
 0x5d2   : > { %v1017_v23 = vadd.f32 1.0, %v1327_v22 }
 0x5d3   : > { %v1329_v24 = vpop.eup %1328 }
 0x5d4   : > { %1330 = vrcp.f32 %v1017_v23  ;;  %v1018_v25 = vadd.f32 1.0, %v1329_v24 }
 0x5d6   : > { %1332 = vrcp.f32 %v1018_v25 }
 0x5e1   : > { %v1331_v30 = vpop.eup %1330 }
 0x5e2   : > { %v1040_v34 = vrot.slane %v1331_v30, %v927_v13 }
 0x5e3   : > { %v1333_v32 = vpop.eup %1332 }
 0x5e4   : > { %v1044_v35 = vrot.slane %v1333_v32, %v927_v13 }
 0x5e6   : > { %v1047_v36 = vcombine.low %v1040_v34, %v1044_v35 }
 0x5e8   : > { %v1049_v38 = vmul.f32 %v1047_v36, %v917_v4 }
 0x5ea   : > { %v1050_v39 = vadd.f32 %v1049_v38, %v1036_v37 }
 0x5ec   : > { %1051 = vst [vmem:[%s1625_s27] sm:$0xff] %v1050_v39 }
 0x5ed PF: > { %s1194_s30 = sshll.u32 %s1446_s9, 7  ;;  %s1070_s23 = sshll.u32 %s1625_s27, 4  ;;  %s1071_s23 = int_to_ptr.vmem [resolvable:$true] %s1070_s23 }
 0x5ee   : > { %s1068_s10 = scalar_lea.hbm %s1745_s8, %s1194_s30  ;;  %s1053_s25 = scalar_lea.sflag [#allocation10], %s1615_s18 }
 0x5ef   : > { %s1362_s15 = scalar_lea.vmem %s1071_s23, 128  ;;  %s1470_s16 = smov [#allocation11]  }
 0x5f0   : > { %p1363_p11 = scmp.ne.s32.totalorder %s1071_s23, %s1362_s15  ;;  %s1366_s19 = sshll.u32 %s1470_s16, 4  ;;  %s1367_s19 = int_to_ptr.vmem [resolvable:$false] %s1366_s19 }
 0x5f1   : > { %s1368_s21 = scalar_lea.vmem %s1367_s19, 256  ;;  %p1369_p4 = scmp.lt.s32.totalorder %s1071_s23, %s1367_s19 }
 0x5f2   : > { %p1364_p1 = pnand %p1363_p11, %p1579_p10  ;;  %p1370_p5 = scmp.lt.s32.totalorder %s1368_s21, %s1362_s15 }
 0x5f4   : > { %p1365_p2 = pneg %p1364_p1  ;;  %p1371_p6 = por %p1370_p5, %p1369_p4 }
 0x5f6   : > { %p1372_p7 = pnand %p1371_p6, %p1365_p2 }
 0x5f8   : > { %1375 = shalt.err (!%p1372_p7)
}
 0x5f9   : > { %s1376_s9 = scalar_lea.hbm %s1068_s10, 128  ;;  %s1380_s17 = scalar_lea.hbm %s1745_s8, 256 }
 0x5fa   : > { %p1377_p8 = scmp.ne.s32.totalorder %s1068_s10, %s1376_s9  ;;  %p1381_p13 = scmp.lt.s32.totalorder %s1068_s10, %s1745_s8 }
 0x5fb   : > { %p1382_p0 = scmp.lt.s32.totalorder %s1380_s17, %s1376_s9 }
 0x5fc   : > { %p1378_p12 = pnand %p1377_p8, %p1579_p10 }
 0x5fd   : > { %p1383_p9 = por %p1382_p0, %p1381_p13 }
 0x5fe   : > { %p1379_p3 = pneg %p1378_p12 }
 0x600   : > { %p1384_p11 = pnand %p1383_p9, %p1379_p3 }
 0x602   : > { %1387 = shalt.err (!%p1384_p11)
}
 0x603   : > { %1218 = dma.vmem_to_hbm [thread:$0]  (%p1579_p10), %s1071_s23, 128, %s1068_s10, %s1053_s25  }
 0x604 PF: > { %s1758_s14 = sld [smem:[#allocation14_spill]]  ;;  %p1229_p1 = scmp.ge.s32.totalorder %s1458_s12, 2 }
 0x605   : > { %p1759_p2 = scmp.ne.s32.totalorder %s1756_s22, 0 }
 0x607   : > { %p1225_p4 = pnand %p1229_p1, %p1759_p2 }
 0x609   : > { %p1226_p5 = pneg %p1225_p4 }
 0x60a   : > { %s1082_s26 = sand.u32 1, %s1758_s14  }
 0x60b   : > { %s1083_s15 = scalar_lea.sflag [#allocation10], %s1082_s26 }
 0x60c   : > { %1425 = dma.done.wait (%p1226_p5), %s1083_s15, 128  }
 0x60d   : > { %1427 = vsyncadd (%p1226_p5), %s1083_s15, 4294967168  ;;  %s24_s12 = sadd.s32 1, %s1458_s12   ;;  %s1760_s30 = sld [smem:[#allocation15_spill]] }
 0x60e   : > { %p21_p6 = scmp.ge.s32.totalorder %s24_s12, 6   ;;  %s1761_s10 = sld [smem:[#allocation16_spill]] }
 0x60f   : > { %s1762_s20 = sld [smem:[#allocation17_spill]]  ;;  %s1763_s27 = smov %s1434_s28 }
 0x610   : > { %s1764_s28 = smov %s1438_s29  ;;  %s1765_s29 = smov %s1592_s24 }
 0x611   : > { %s1766_s9 = smov %s1454_s11  ;;  %23 = sbr.rel (!%p21_p6) target bundleno = 7 (0x7), region = 113 }
 0x615   : > { %s1767_s11 = smov %s1762_s20 }
 0x616   :  { %1088 = vsyncpa [#allocation9], 1 }
 0x617   :  { %1090 = vsyncpa [#allocation9 + $0x1], 1 }
 0x618   :  { %1091 = vsyncpa [#allocation10], 1 }
 0x619   :  { %1093 = vsyncpa [#allocation10 + $0x1], 1 }

</bundles_post_ra>
